<compile_context>
chip_gen: v5e
topology: v5e:2x2
jax: 0.10.0
libtpu: 0.0.40
codegen_flags: <defaults>
</compile_context>

<pallas_src>
import jax
import jax.numpy as jnp
from jax.experimental import pallas as pl
from jax.experimental.pallas import tpu as pltpu


def _make_kernel(oc, hw):
    def kernel(xt_ref, wc_ref, bc_ref, w1t_ref, b1_ref, w2t_ref, b2_ref,
               out_ref, a_ref):
        # Conv2d(1->oc, k=2, s=1, valid) + ReLU, materialized channel-block by
        # channel-block into the lane-dense (TN, oc*hw) activation scratch in
        # PyTorch flatten order f = c*hw + i*Wo + j.
        t0 = xt_ref[0]          # tap (0,0): (TN, hw)
        t1 = xt_ref[1]          # tap (0,1)
        t2 = xt_ref[2]          # tap (1,0)
        t3 = xt_ref[3]          # tap (1,1)
        for c in range(oc):     # 8 iterations, 4 scalar*vector FMAs each
            conv_c = (wc_ref[c, 0] * t0 + wc_ref[c, 1] * t1 +
                      wc_ref[c, 2] * t2 + wc_ref[c, 3] * t3 + bc_ref[c])
            a_ref[:, c * hw:(c + 1) * hw] = jnp.maximum(conv_c, 0.0)

        # fc1: single K = oc*hw (=512) MXU matmul + bias + ReLU.
        h = jnp.dot(a_ref[...], w1t_ref[...],
                    preferred_element_type=jnp.float32) + b1_ref[...]
        h = jnp.maximum(h, 0.0)

        # fc2 as an MXU matmul (TN, M1) @ (M1, 1).
        out = jnp.dot(h, w2t_ref[...],
                      preferred_element_type=jnp.float32) + b2_ref[0]
        out_ref[...] = out.astype(out_ref.dtype)
    return kernel


def sandnet2d_forward(x_nchw, params, *, batch_tile=128):
    """Pallas TPU implementation of Sandnet2d.forward."""
    wc, bc, w1, b1, w2, b2 = params
    n, cin, h, w = x_nchw.shape
    assert cin == 1
    oc = wc.shape[0]
    ho, wo = h - 1, w - 1                       # valid conv, kernel 2, stride 1
    hw = ho * wo
    m1 = w1.shape[0]
    assert w1.shape[1] == oc * hw               # == module's input_size

    x = x_nchw[:, 0, :, :].astype(jnp.float32)  # (N, H, W)
    # Four 2x2-conv taps, each flattened over (Ho, Wo): (4, N, hw).  Pure glue.
    taps = [x[:, ki:ki + ho, kj:kj + wo].reshape(n, hw)
            for ki in (0, 1) for kj in (0, 1)]
    xt = jnp.stack(taps, axis=0)

    # Batch tile: multiple of 8 (f32 sublane); pad batch up to a multiple.
    tn = batch_tile if n >= batch_tile else max(8, -(-n // 8) * 8)
    n_pad = -(-n // tn) * tn
    if n_pad != n:
        xt = jnp.pad(xt, ((0, 0), (0, n_pad - n), (0, 0)))
    nb = n_pad // tn

    wc_flat = wc.reshape(oc, 4).astype(jnp.float32)          # (OC, kh*kw) scalars
    bc_f = bc.astype(jnp.float32)                            # (OC,)
    w1t = w1.astype(jnp.float32).T                           # (OC*hw, M1): K lane-dense
    b1r = b1.reshape(1, m1).astype(jnp.float32)
    w2t = w2.astype(jnp.float32).reshape(1, m1).T            # (M1, 1)
    b2r = b2.reshape(1).astype(jnp.float32)

    kernel = _make_kernel(oc, hw)
    out_padded = pl.pallas_call(
        kernel,
        out_shape=jax.ShapeDtypeStruct((n_pad, 1), jnp.float32),
        grid_spec=pltpu.PrefetchScalarGridSpec(
            num_scalar_prefetch=0,
            grid=(nb,),
            in_specs=[
                pl.BlockSpec((4, tn, hw), lambda b: (0, b, 0)),        # conv taps
                pl.BlockSpec((oc, 4), lambda b: (0, 0),
                             memory_space=pltpu.MemorySpace.SMEM),     # conv weight
                pl.BlockSpec((oc,), lambda b: (0,),
                             memory_space=pltpu.MemorySpace.SMEM),     # conv bias
                pl.BlockSpec((oc * hw, m1), lambda b: (0, 0)),         # fc1 W^T (resident)
                pl.BlockSpec((1, m1), lambda b: (0, 0)),               # fc1 bias
                pl.BlockSpec((m1, 1), lambda b: (0, 0)),               # fc2 W^T
                pl.BlockSpec((1,), lambda b: (0,),
                             memory_space=pltpu.MemorySpace.SMEM),     # fc2 bias
            ],
            out_specs=pl.BlockSpec((tn, 1), lambda b: (b, 0)),
            scratch_shapes=[pltpu.VMEM((tn, oc * hw), jnp.float32)],   # conv activations
        ),
        compiler_params=pltpu.CompilerParams(
            dimension_semantics=("parallel",)),
    )(xt, wc_flat, bc_f, w1t, b1r, w2t, b2r)
    return out_padded[:n]


def sandnet2d_reference(x_nchw, params):
    """Plain-JAX reference mirroring the PyTorch forward exactly."""
    wc, bc, w1, b1, w2, b2 = params
    conv = jax.lax.conv_general_dilated(
        x_nchw, wc, window_strides=(1, 1), padding="VALID",
        dimension_numbers=("NCHW", "OIHW", "NCHW"),
        precision=jax.lax.Precision.HIGHEST)
    conv = jnp.maximum(conv + bc.reshape(1, -1, 1, 1), 0.0)
    flat = conv.reshape(conv.shape[0], -1)
    hfc = jnp.maximum(
        jnp.dot(flat, w1.T, precision=jax.lax.Precision.HIGHEST) + b1, 0.0)
    return jnp.dot(hfc, w2.T, precision=jax.lax.Precision.HIGHEST) + b2


if __name__ == "__main__":
    # Small shapes consistent with the module: 9x9 single-channel input
    # -> conv output (8, 8, 8) -> input_size = 512, fc1: 512->256, fc2: 256->1.
    N, H, W = 2, 9, 9
    OC, M1 = 8, 256
    in_feat = OC * (H - 1) * (W - 1)             # 512 (== module's input_size)

    key = jax.random.PRNGKey(0)
    ks = jax.random.split(key, 7)
    x = jax.random.normal(ks[0], (N, 1, H, W), jnp.float32)
    wc = 0.2 * jax.random.normal(ks[1], (OC, 1, 2, 2), jnp.float32)   # conv weight
    bc = 0.1 * jax.random.normal(ks[2], (OC,), jnp.float32)           # conv bias
    w1 = 0.05 * jax.random.normal(ks[3], (M1, in_feat), jnp.float32)  # fc1 weight
    b1 = 0.05 * jax.random.normal(ks[4], (M1,), jnp.float32)          # fc1 bias
    w2 = 0.05 * jax.random.normal(ks[5], (1, M1), jnp.float32)        # fc2 weight
    b2 = 0.05 * jax.random.normal(ks[6], (1,), jnp.float32)           # fc2 bias
    params = (wc, bc, w1, b1, w2, b2)

    out = jax.block_until_ready(sandnet2d_forward(x, params))
    ref = jax.block_until_ready(sandnet2d_reference(x, params))
    assert out.shape == (N, 1), out.shape
    if not jnp.allclose(out, ref, rtol=2e-2, atol=2e-3):
        raise AssertionError(f"mismatch:\nkernel={out}\nref={ref}")
    print("KERNEL_OK")
</pallas_src>

<mosaic_0001>
module attributes {stable_mosaic.version = 11 : i64} {
  func.func @kernel(%arg0: i32, %arg1: memref<4x8x64xf32, #tpu.memory_space<vmem>>, %arg2: memref<8x4xf32, #tpu.memory_space<smem>>, %arg3: memref<8xf32, #tpu.memory_space<smem>>, %arg4: memref<512x256xf32, #tpu.memory_space<vmem>>, %arg5: memref<1x256xf32, #tpu.memory_space<vmem>>, %arg6: memref<256x1xf32, #tpu.memory_space<vmem>>, %arg7: memref<1xf32, #tpu.memory_space<smem>>, %arg8: memref<8x1xf32, #tpu.memory_space<vmem>>, %arg9: memref<8x512xf32, #tpu.memory_space<vmem>>) attributes {dimension_semantics = [#tpu.dimension_semantics<parallel>], iteration_bounds = array<i64: 1>, scalar_prefetch = 0 : i64, scratch_operands = 1 : i64, tpu.core_type = #tpu.core_type<tc>, window_params = [{transform_indices = @transform_0, window_bounds = array<i64: 4, 8, 64>}, {transform_indices = @transform_1, window_bounds = array<i64: 8, 4>}, {transform_indices = @transform_2, window_bounds = array<i64: 8>}, {pipeline_mode = #tpu.pipeline_mode<synchronous>, transform_indices = @transform_3, window_bounds = array<i64: 512, 256>}, {pipeline_mode = #tpu.pipeline_mode<synchronous>, transform_indices = @transform_4, window_bounds = array<i64: 1, 256>}, {pipeline_mode = #tpu.pipeline_mode<synchronous>, transform_indices = @transform_5, window_bounds = array<i64: 256, 1>}, {transform_indices = @transform_6, window_bounds = array<i64: 1>}, {transform_indices = @transform_7, window_bounds = array<i64: 8, 1>}]} {
    %c0 = arith.constant 0 : index
    %c0_0 = arith.constant 0 : index
    %c0_1 = arith.constant 0 : index
    %0 = vector.load %arg1[%c0, %c0_0, %c0_1] : memref<4x8x64xf32, #tpu.memory_space<vmem>>, vector<1x8x64xf32>
    %1 = vector.shape_cast %0 : vector<1x8x64xf32> to vector<8x64xf32>
    %c1 = arith.constant 1 : index
    %c0_2 = arith.constant 0 : index
    %c0_3 = arith.constant 0 : index
    %2 = vector.load %arg1[%c1, %c0_2, %c0_3] : memref<4x8x64xf32, #tpu.memory_space<vmem>>, vector<1x8x64xf32>
    %3 = vector.shape_cast %2 : vector<1x8x64xf32> to vector<8x64xf32>
    %c2 = arith.constant 2 : index
    %c0_4 = arith.constant 0 : index
    %c0_5 = arith.constant 0 : index
    %4 = vector.load %arg1[%c2, %c0_4, %c0_5] : memref<4x8x64xf32, #tpu.memory_space<vmem>>, vector<1x8x64xf32>
    %5 = vector.shape_cast %4 : vector<1x8x64xf32> to vector<8x64xf32>
    %c3 = arith.constant 3 : index
    %c0_6 = arith.constant 0 : index
    %c0_7 = arith.constant 0 : index
    %6 = vector.load %arg1[%c3, %c0_6, %c0_7] : memref<4x8x64xf32, #tpu.memory_space<vmem>>, vector<1x8x64xf32>
    %7 = vector.shape_cast %6 : vector<1x8x64xf32> to vector<8x64xf32>
    %c0_8 = arith.constant 0 : index
    %c0_9 = arith.constant 0 : index
    %8 = memref.load %arg2[%c0_8, %c0_9] : memref<8x4xf32, #tpu.memory_space<smem>>
    %9 = vector.broadcast %8 : f32 to vector<8x64xf32>
    %10 = arith.mulf %9, %1 : vector<8x64xf32>
    %c0_10 = arith.constant 0 : index
    %c1_11 = arith.constant 1 : index
    %11 = memref.load %arg2[%c0_10, %c1_11] : memref<8x4xf32, #tpu.memory_space<smem>>
    %12 = vector.broadcast %11 : f32 to vector<8x64xf32>
    %13 = arith.mulf %12, %3 : vector<8x64xf32>
    %14 = arith.addf %10, %13 : vector<8x64xf32>
    %c0_12 = arith.constant 0 : index
    %c2_13 = arith.constant 2 : index
    %15 = memref.load %arg2[%c0_12, %c2_13] : memref<8x4xf32, #tpu.memory_space<smem>>
    %16 = vector.broadcast %15 : f32 to vector<8x64xf32>
    %17 = arith.mulf %16, %5 : vector<8x64xf32>
    %18 = arith.addf %14, %17 : vector<8x64xf32>
    %c0_14 = arith.constant 0 : index
    %c3_15 = arith.constant 3 : index
    %19 = memref.load %arg2[%c0_14, %c3_15] : memref<8x4xf32, #tpu.memory_space<smem>>
    %20 = vector.broadcast %19 : f32 to vector<8x64xf32>
    %21 = arith.mulf %20, %7 : vector<8x64xf32>
    %22 = arith.addf %18, %21 : vector<8x64xf32>
    %c0_16 = arith.constant 0 : index
    %23 = memref.load %arg3[%c0_16] : memref<8xf32, #tpu.memory_space<smem>>
    %24 = vector.broadcast %23 : f32 to vector<8x64xf32>
    %25 = arith.addf %22, %24 : vector<8x64xf32>
    %cst = arith.constant 0.000000e+00 : f32
    %26 = vector.broadcast %cst : f32 to vector<8x64xf32>
    %27 = arith.maximumf %25, %26 : vector<8x64xf32>
    %c0_17 = arith.constant 0 : index
    %c0_18 = arith.constant 0 : index
    %28 = vector.load %arg9[%c0_17, %c0_18] : memref<8x512xf32, #tpu.memory_space<vmem>>, vector<8x64xf32>
    tpu.vector_store %arg9[%c0_17, %c0_18], %27 {strides = array<i32>} : memref<8x512xf32, #tpu.memory_space<vmem>>, vector<8x64xf32>,
    %c1_19 = arith.constant 1 : index
    %c0_20 = arith.constant 0 : index
    %29 = memref.load %arg2[%c1_19, %c0_20] : memref<8x4xf32, #tpu.memory_space<smem>>
    %30 = vector.broadcast %29 : f32 to vector<8x64xf32>
    %31 = arith.mulf %30, %1 : vector<8x64xf32>
    %c1_21 = arith.constant 1 : index
    %c1_22 = arith.constant 1 : index
    %32 = memref.load %arg2[%c1_21, %c1_22] : memref<8x4xf32, #tpu.memory_space<smem>>
    %33 = vector.broadcast %32 : f32 to vector<8x64xf32>
    %34 = arith.mulf %33, %3 : vector<8x64xf32>
    %35 = arith.addf %31, %34 : vector<8x64xf32>
    %c1_23 = arith.constant 1 : index
    %c2_24 = arith.constant 2 : index
    %36 = memref.load %arg2[%c1_23, %c2_24] : memref<8x4xf32, #tpu.memory_space<smem>>
    %37 = vector.broadcast %36 : f32 to vector<8x64xf32>
    %38 = arith.mulf %37, %5 : vector<8x64xf32>
    %39 = arith.addf %35, %38 : vector<8x64xf32>
    %c1_25 = arith.constant 1 : index
    %c3_26 = arith.constant 3 : index
    %40 = memref.load %arg2[%c1_25, %c3_26] : memref<8x4xf32, #tpu.memory_space<smem>>
    %41 = vector.broadcast %40 : f32 to vector<8x64xf32>
    %42 = arith.mulf %41, %7 : vector<8x64xf32>
    %43 = arith.addf %39, %42 : vector<8x64xf32>
    %c1_27 = arith.constant 1 : index
    %44 = memref.load %arg3[%c1_27] : memref<8xf32, #tpu.memory_space<smem>>
    %45 = vector.broadcast %44 : f32 to vector<8x64xf32>
    %46 = arith.addf %43, %45 : vector<8x64xf32>
    %cst_28 = arith.constant 0.000000e+00 : f32
    %47 = vector.broadcast %cst_28 : f32 to vector<8x64xf32>
    %48 = arith.maximumf %46, %47 : vector<8x64xf32>
    %c0_29 = arith.constant 0 : index
    %c64 = arith.constant 64 : index
    %49 = vector.load %arg9[%c0_29, %c64] : memref<8x512xf32, #tpu.memory_space<vmem>>, vector<8x64xf32>
    tpu.vector_store %arg9[%c0_29, %c64], %48 {strides = array<i32>} : memref<8x512xf32, #tpu.memory_space<vmem>>, vector<8x64xf32>,
    %c2_30 = arith.constant 2 : index
    %c0_31 = arith.constant 0 : index
    %50 = memref.load %arg2[%c2_30, %c0_31] : memref<8x4xf32, #tpu.memory_space<smem>>
    %51 = vector.broadcast %50 : f32 to vector<8x64xf32>
    %52 = arith.mulf %51, %1 : vector<8x64xf32>
    %c2_32 = arith.constant 2 : index
    %c1_33 = arith.constant 1 : index
    %53 = memref.load %arg2[%c2_32, %c1_33] : memref<8x4xf32, #tpu.memory_space<smem>>
    %54 = vector.broadcast %53 : f32 to vector<8x64xf32>
    %55 = arith.mulf %54, %3 : vector<8x64xf32>
    %56 = arith.addf %52, %55 : vector<8x64xf32>
    %c2_34 = arith.constant 2 : index
    %c2_35 = arith.constant 2 : index
    %57 = memref.load %arg2[%c2_34, %c2_35] : memref<8x4xf32, #tpu.memory_space<smem>>
    %58 = vector.broadcast %57 : f32 to vector<8x64xf32>
    %59 = arith.mulf %58, %5 : vector<8x64xf32>
    %60 = arith.addf %56, %59 : vector<8x64xf32>
    %c2_36 = arith.constant 2 : index
    %c3_37 = arith.constant 3 : index
    %61 = memref.load %arg2[%c2_36, %c3_37] : memref<8x4xf32, #tpu.memory_space<smem>>
    %62 = vector.broadcast %61 : f32 to vector<8x64xf32>
    %63 = arith.mulf %62, %7 : vector<8x64xf32>
    %64 = arith.addf %60, %63 : vector<8x64xf32>
    %c2_38 = arith.constant 2 : index
    %65 = memref.load %arg3[%c2_38] : memref<8xf32, #tpu.memory_space<smem>>
    %66 = vector.broadcast %65 : f32 to vector<8x64xf32>
    %67 = arith.addf %64, %66 : vector<8x64xf32>
    %cst_39 = arith.constant 0.000000e+00 : f32
    %68 = vector.broadcast %cst_39 : f32 to vector<8x64xf32>
    %69 = arith.maximumf %67, %68 : vector<8x64xf32>
    %c0_40 = arith.constant 0 : index
    %c128 = arith.constant 128 : index
    %70 = vector.load %arg9[%c0_40, %c128] : memref<8x512xf32, #tpu.memory_space<vmem>>, vector<8x64xf32>
    tpu.vector_store %arg9[%c0_40, %c128], %69 {strides = array<i32>} : memref<8x512xf32, #tpu.memory_space<vmem>>, vector<8x64xf32>,
    %c3_41 = arith.constant 3 : index
    %c0_42 = arith.constant 0 : index
    %71 = memref.load %arg2[%c3_41, %c0_42] : memref<8x4xf32, #tpu.memory_space<smem>>
    %72 = vector.broadcast %71 : f32 to vector<8x64xf32>
    %73 = arith.mulf %72, %1 : vector<8x64xf32>
    %c3_43 = arith.constant 3 : index
    %c1_44 = arith.constant 1 : index
    %74 = memref.load %arg2[%c3_43, %c1_44] : memref<8x4xf32, #tpu.memory_space<smem>>
    %75 = vector.broadcast %74 : f32 to vector<8x64xf32>
    %76 = arith.mulf %75, %3 : vector<8x64xf32>
    %77 = arith.addf %73, %76 : vector<8x64xf32>
    %c3_45 = arith.constant 3 : index
    %c2_46 = arith.constant 2 : index
    %78 = memref.load %arg2[%c3_45, %c2_46] : memref<8x4xf32, #tpu.memory_space<smem>>
    %79 = vector.broadcast %78 : f32 to vector<8x64xf32>
    %80 = arith.mulf %79, %5 : vector<8x64xf32>
    %81 = arith.addf %77, %80 : vector<8x64xf32>
    %c3_47 = arith.constant 3 : index
    %c3_48 = arith.constant 3 : index
    %82 = memref.load %arg2[%c3_47, %c3_48] : memref<8x4xf32, #tpu.memory_space<smem>>
    %83 = vector.broadcast %82 : f32 to vector<8x64xf32>
    %84 = arith.mulf %83, %7 : vector<8x64xf32>
    %85 = arith.addf %81, %84 : vector<8x64xf32>
    %c3_49 = arith.constant 3 : index
    %86 = memref.load %arg3[%c3_49] : memref<8xf32, #tpu.memory_space<smem>>
    %87 = vector.broadcast %86 : f32 to vector<8x64xf32>
    %88 = arith.addf %85, %87 : vector<8x64xf32>
    %cst_50 = arith.constant 0.000000e+00 : f32
    %89 = vector.broadcast %cst_50 : f32 to vector<8x64xf32>
    %90 = arith.maximumf %88, %89 : vector<8x64xf32>
    %c0_51 = arith.constant 0 : index
    %c192 = arith.constant 192 : index
    %91 = vector.load %arg9[%c0_51, %c192] : memref<8x512xf32, #tpu.memory_space<vmem>>, vector<8x64xf32>
    tpu.vector_store %arg9[%c0_51, %c192], %90 {strides = array<i32>} : memref<8x512xf32, #tpu.memory_space<vmem>>, vector<8x64xf32>,
    %c4 = arith.constant 4 : index
    %c0_52 = arith.constant 0 : index
    %92 = memref.load %arg2[%c4, %c0_52] : memref<8x4xf32, #tpu.memory_space<smem>>
    %93 = vector.broadcast %92 : f32 to vector<8x64xf32>
    %94 = arith.mulf %93, %1 : vector<8x64xf32>
    %c4_53 = arith.constant 4 : index
    %c1_54 = arith.constant 1 : index
    %95 = memref.load %arg2[%c4_53, %c1_54] : memref<8x4xf32, #tpu.memory_space<smem>>
    %96 = vector.broadcast %95 : f32 to vector<8x64xf32>
    %97 = arith.mulf %96, %3 : vector<8x64xf32>
    %98 = arith.addf %94, %97 : vector<8x64xf32>
    %c4_55 = arith.constant 4 : index
    %c2_56 = arith.constant 2 : index
    %99 = memref.load %arg2[%c4_55, %c2_56] : memref<8x4xf32, #tpu.memory_space<smem>>
    %100 = vector.broadcast %99 : f32 to vector<8x64xf32>
    %101 = arith.mulf %100, %5 : vector<8x64xf32>
    %102 = arith.addf %98, %101 : vector<8x64xf32>
    %c4_57 = arith.constant 4 : index
    %c3_58 = arith.constant 3 : index
    %103 = memref.load %arg2[%c4_57, %c3_58] : memref<8x4xf32, #tpu.memory_space<smem>>
    %104 = vector.broadcast %103 : f32 to vector<8x64xf32>
    %105 = arith.mulf %104, %7 : vector<8x64xf32>
    %106 = arith.addf %102, %105 : vector<8x64xf32>
    %c4_59 = arith.constant 4 : index
    %107 = memref.load %arg3[%c4_59] : memref<8xf32, #tpu.memory_space<smem>>
    %108 = vector.broadcast %107 : f32 to vector<8x64xf32>
    %109 = arith.addf %106, %108 : vector<8x64xf32>
    %cst_60 = arith.constant 0.000000e+00 : f32
    %110 = vector.broadcast %cst_60 : f32 to vector<8x64xf32>
    %111 = arith.maximumf %109, %110 : vector<8x64xf32>
    %c0_61 = arith.constant 0 : index
    %c256 = arith.constant 256 : index
    %112 = vector.load %arg9[%c0_61, %c256] : memref<8x512xf32, #tpu.memory_space<vmem>>, vector<8x64xf32>
    tpu.vector_store %arg9[%c0_61, %c256], %111 {strides = array<i32>} : memref<8x512xf32, #tpu.memory_space<vmem>>, vector<8x64xf32>,
    %c5 = arith.constant 5 : index
    %c0_62 = arith.constant 0 : index
    %113 = memref.load %arg2[%c5, %c0_62] : memref<8x4xf32, #tpu.memory_space<smem>>
    %114 = vector.broadcast %113 : f32 to vector<8x64xf32>
    %115 = arith.mulf %114, %1 : vector<8x64xf32>
    %c5_63 = arith.constant 5 : index
    %c1_64 = arith.constant 1 : index
    %116 = memref.load %arg2[%c5_63, %c1_64] : memref<8x4xf32, #tpu.memory_space<smem>>
    %117 = vector.broadcast %116 : f32 to vector<8x64xf32>
    %118 = arith.mulf %117, %3 : vector<8x64xf32>
    %119 = arith.addf %115, %118 : vector<8x64xf32>
    %c5_65 = arith.constant 5 : index
    %c2_66 = arith.constant 2 : index
    %120 = memref.load %arg2[%c5_65, %c2_66] : memref<8x4xf32, #tpu.memory_space<smem>>
    %121 = vector.broadcast %120 : f32 to vector<8x64xf32>
    %122 = arith.mulf %121, %5 : vector<8x64xf32>
    %123 = arith.addf %119, %122 : vector<8x64xf32>
    %c5_67 = arith.constant 5 : index
    %c3_68 = arith.constant 3 : index
    %124 = memref.load %arg2[%c5_67, %c3_68] : memref<8x4xf32, #tpu.memory_space<smem>>
    %125 = vector.broadcast %124 : f32 to vector<8x64xf32>
    %126 = arith.mulf %125, %7 : vector<8x64xf32>
    %127 = arith.addf %123, %126 : vector<8x64xf32>
    %c5_69 = arith.constant 5 : index
    %128 = memref.load %arg3[%c5_69] : memref<8xf32, #tpu.memory_space<smem>>
    %129 = vector.broadcast %128 : f32 to vector<8x64xf32>
    %130 = arith.addf %127, %129 : vector<8x64xf32>
    %cst_70 = arith.constant 0.000000e+00 : f32
    %131 = vector.broadcast %cst_70 : f32 to vector<8x64xf32>
    %132 = arith.maximumf %130, %131 : vector<8x64xf32>
    %c0_71 = arith.constant 0 : index
    %c320 = arith.constant 320 : index
    %133 = vector.load %arg9[%c0_71, %c320] : memref<8x512xf32, #tpu.memory_space<vmem>>, vector<8x64xf32>
    tpu.vector_store %arg9[%c0_71, %c320], %132 {strides = array<i32>} : memref<8x512xf32, #tpu.memory_space<vmem>>, vector<8x64xf32>,
    %c6 = arith.constant 6 : index
    %c0_72 = arith.constant 0 : index
    %134 = memref.load %arg2[%c6, %c0_72] : memref<8x4xf32, #tpu.memory_space<smem>>
    %135 = vector.broadcast %134 : f32 to vector<8x64xf32>
    %136 = arith.mulf %135, %1 : vector<8x64xf32>
    %c6_73 = arith.constant 6 : index
    %c1_74 = arith.constant 1 : index
    %137 = memref.load %arg2[%c6_73, %c1_74] : memref<8x4xf32, #tpu.memory_space<smem>>
    %138 = vector.broadcast %137 : f32 to vector<8x64xf32>
    %139 = arith.mulf %138, %3 : vector<8x64xf32>
    %140 = arith.addf %136, %139 : vector<8x64xf32>
    %c6_75 = arith.constant 6 : index
    %c2_76 = arith.constant 2 : index
    %141 = memref.load %arg2[%c6_75, %c2_76] : memref<8x4xf32, #tpu.memory_space<smem>>
    %142 = vector.broadcast %141 : f32 to vector<8x64xf32>
    %143 = arith.mulf %142, %5 : vector<8x64xf32>
    %144 = arith.addf %140, %143 : vector<8x64xf32>
    %c6_77 = arith.constant 6 : index
    %c3_78 = arith.constant 3 : index
    %145 = memref.load %arg2[%c6_77, %c3_78] : memref<8x4xf32, #tpu.memory_space<smem>>
    %146 = vector.broadcast %145 : f32 to vector<8x64xf32>
    %147 = arith.mulf %146, %7 : vector<8x64xf32>
    %148 = arith.addf %144, %147 : vector<8x64xf32>
    %c6_79 = arith.constant 6 : index
    %149 = memref.load %arg3[%c6_79] : memref<8xf32, #tpu.memory_space<smem>>
    %150 = vector.broadcast %149 : f32 to vector<8x64xf32>
    %151 = arith.addf %148, %150 : vector<8x64xf32>
    %cst_80 = arith.constant 0.000000e+00 : f32
    %152 = vector.broadcast %cst_80 : f32 to vector<8x64xf32>
    %153 = arith.maximumf %151, %152 : vector<8x64xf32>
    %c0_81 = arith.constant 0 : index
    %c384 = arith.constant 384 : index
    %154 = vector.load %arg9[%c0_81, %c384] : memref<8x512xf32, #tpu.memory_space<vmem>>, vector<8x64xf32>
    tpu.vector_store %arg9[%c0_81, %c384], %153 {strides = array<i32>} : memref<8x512xf32, #tpu.memory_space<vmem>>, vector<8x64xf32>,
    %c7 = arith.constant 7 : index
    %c0_82 = arith.constant 0 : index
    %155 = memref.load %arg2[%c7, %c0_82] : memref<8x4xf32, #tpu.memory_space<smem>>
    %156 = vector.broadcast %155 : f32 to vector<8x64xf32>
    %157 = arith.mulf %156, %1 : vector<8x64xf32>
    %c7_83 = arith.constant 7 : index
    %c1_84 = arith.constant 1 : index
    %158 = memref.load %arg2[%c7_83, %c1_84] : memref<8x4xf32, #tpu.memory_space<smem>>
    %159 = vector.broadcast %158 : f32 to vector<8x64xf32>
    %160 = arith.mulf %159, %3 : vector<8x64xf32>
    %161 = arith.addf %157, %160 : vector<8x64xf32>
    %c7_85 = arith.constant 7 : index
    %c2_86 = arith.constant 2 : index
    %162 = memref.load %arg2[%c7_85, %c2_86] : memref<8x4xf32, #tpu.memory_space<smem>>
    %163 = vector.broadcast %162 : f32 to vector<8x64xf32>
    %164 = arith.mulf %163, %5 : vector<8x64xf32>
    %165 = arith.addf %161, %164 : vector<8x64xf32>
    %c7_87 = arith.constant 7 : index
    %c3_88 = arith.constant 3 : index
    %166 = memref.load %arg2[%c7_87, %c3_88] : memref<8x4xf32, #tpu.memory_space<smem>>
    %167 = vector.broadcast %166 : f32 to vector<8x64xf32>
    %168 = arith.mulf %167, %7 : vector<8x64xf32>
    %169 = arith.addf %165, %168 : vector<8x64xf32>
    %c7_89 = arith.constant 7 : index
    %170 = memref.load %arg3[%c7_89] : memref<8xf32, #tpu.memory_space<smem>>
    %171 = vector.broadcast %170 : f32 to vector<8x64xf32>
    %172 = arith.addf %169, %171 : vector<8x64xf32>
    %cst_90 = arith.constant 0.000000e+00 : f32
    %173 = vector.broadcast %cst_90 : f32 to vector<8x64xf32>
    %174 = arith.maximumf %172, %173 : vector<8x64xf32>
    %c0_91 = arith.constant 0 : index
    %c448 = arith.constant 448 : index
    %175 = vector.load %arg9[%c0_91, %c448] : memref<8x512xf32, #tpu.memory_space<vmem>>, vector<8x64xf32>
    tpu.vector_store %arg9[%c0_91, %c448], %174 {strides = array<i32>} : memref<8x512xf32, #tpu.memory_space<vmem>>, vector<8x64xf32>,
    %c0_92 = arith.constant 0 : index
    %c0_93 = arith.constant 0 : index
    %176 = vector.load %arg9[%c0_92, %c0_93] : memref<8x512xf32, #tpu.memory_space<vmem>>, vector<8x512xf32>
    %c0_94 = arith.constant 0 : index
    %c0_95 = arith.constant 0 : index
    %177 = vector.load %arg4[%c0_94, %c0_95] : memref<512x256xf32, #tpu.memory_space<vmem>>, vector<512x256xf32>
    %cst_96 = arith.constant dense<0.000000e+00> : vector<8x256xf32>
    %178 = tpu.matmul %176, %177, %cst_96 {dimension_numbers = #tpu.dot_dimension_numbers<[1], [0], [0], [1], [0, 0, 1, 1], [], []>} : vector<8x512xf32>, vector<512x256xf32>, vector<8x256xf32> -> vector<8x256xf32>
    %c0_97 = arith.constant 0 : index
    %c0_98 = arith.constant 0 : index
    %179 = vector.load %arg5[%c0_97, %c0_98] : memref<1x256xf32, #tpu.memory_space<vmem>>, vector<1x256xf32>
    %180 = vector.broadcast %179 : vector<1x256xf32> to vector<8x256xf32>
    %181 = arith.addf %178, %180 : vector<8x256xf32>
    %cst_99 = arith.constant 0.000000e+00 : f32
    %182 = vector.broadcast %cst_99 : f32 to vector<8x256xf32>
    %183 = arith.maximumf %181, %182 : vector<8x256xf32>
    %c0_100 = arith.constant 0 : index
    %c0_101 = arith.constant 0 : index
    %184 = vector.load %arg6[%c0_100, %c0_101] : memref<256x1xf32, #tpu.memory_space<vmem>>, vector<256x1xf32>
    %cst_102 = arith.constant dense<0.000000e+00> : vector<8x1xf32>
    %185 = tpu.matmul %183, %184, %cst_102 {dimension_numbers = #tpu.dot_dimension_numbers<[1], [0], [0], [1], [0, 0, 1, 1], [], []>} : vector<8x256xf32>, vector<256x1xf32>, vector<8x1xf32> -> vector<8x1xf32>
    %c0_103 = arith.constant 0 : index
    %186 = memref.load %arg7[%c0_103] : memref<1xf32, #tpu.memory_space<smem>>
    %187 = vector.broadcast %186 : f32 to vector<8x1xf32>
    %188 = arith.addf %185, %187 : vector<8x1xf32>
    %c0_104 = arith.constant 0 : index
    %c0_105 = arith.constant 0 : index
    %189 = vector.load %arg8[%c0_104, %c0_105] : memref<8x1xf32, #tpu.memory_space<vmem>>, vector<8x1xf32>
    tpu.vector_store %arg8[%c0_104, %c0_105], %188 {strides = array<i32>} : memref<8x1xf32, #tpu.memory_space<vmem>>, vector<8x1xf32>,
    return
  }
  func.func @transform_0(%arg0: i32) -> (i32, i32, i32) {
    %c0_i32 = arith.constant 0 : i32
    %c0_i32_0 = arith.constant 0 : i32
    %c0_i32_1 = arith.constant 0 : i32
    return %c0_i32, %arg0, %c0_i32_0 : i32, i32, i32
  }
  func.func @transform_1(%arg0: i32) -> (i32, i32) {
    %c0_i32 = arith.constant 0 : i32
    %c0_i32_0 = arith.constant 0 : i32
    %c0_i32_1 = arith.constant 0 : i32
    return %c0_i32, %c0_i32_0 : i32, i32
  }
  func.func @transform_2(%arg0: i32) -> i32 {
    %c0_i32 = arith.constant 0 : i32
    %c0_i32_0 = arith.constant 0 : i32
    return %c0_i32 : i32
  }
  func.func @transform_3(%arg0: i32) -> (i32, i32) {
    %c0_i32 = arith.constant 0 : i32
    %c0_i32_0 = arith.constant 0 : i32
    %c0_i32_1 = arith.constant 0 : i32
    return %c0_i32, %c0_i32_0 : i32, i32
  }
  func.func @transform_4(%arg0: i32) -> (i32, i32) {
    %c0_i32 = arith.constant 0 : i32
    %c0_i32_0 = arith.constant 0 : i32
    %c0_i32_1 = arith.constant 0 : i32
    return %c0_i32, %c0_i32_0 : i32, i32
  }
  func.func @transform_5(%arg0: i32) -> (i32, i32) {
    %c0_i32 = arith.constant 0 : i32
    %c0_i32_0 = arith.constant 0 : i32
    %c0_i32_1 = arith.constant 0 : i32
    return %c0_i32, %c0_i32_0 : i32, i32
  }
  func.func @transform_6(%arg0: i32) -> i32 {
    %c0_i32 = arith.constant 0 : i32
    %c0_i32_0 = arith.constant 0 : i32
    return %c0_i32 : i32
  }
  func.func @transform_7(%arg0: i32) -> (i32, i32) {
    %c0_i32 = arith.constant 0 : i32
    %c0_i32_0 = arith.constant 0 : i32
    return %arg0, %c0_i32 : i32, i32
  }
}

</mosaic_0001>

<bundles_post_ra>
// kernel: tpu_custom_call.1
= control target key start
LH: loop header
LB: loop body
LE: loop exit
PB: predicated region body
PF: predicated region fallthrough
CT: control target
= control target key end

     0   :  { %13 = vsyncpa [#allocation6], 0  ;;  %s1050_s0 = inlined_call_operand.vmem [shape: f32[4,8,64], index: 0, kind: input, shape index: {}]   ;;  %s1051_s1 = inlined_call_operand.vmem [shape: f32[8,4], index: 1, kind: input, shape index: {}]   ;;  %s1052_s2 = inlined_call_operand.vmem [shape: f32[8], index: 2, kind: input, shape index: {}]   ;;  %s1053_s3 = inlined_call_operand.hbm [shape: f32[512,256], index: 3, kind: input, shape index: {}]   ;;  %s1054_s4 = inlined_call_operand.vmem [shape: f32[1,256], index: 4, kind: input, shape index: {}]   ;;  %s1055_s5 = inlined_call_operand.vmem [shape: f32[256,1], index: 5, kind: input, shape index: {}]   ;;  %s1056_s6 = inlined_call_operand.<no memory space> [shape: f32[1], index: 6, kind: input, shape index: {}]   ;;  %s1057_s7 = inlined_call_operand.vmem [shape: f32[8,1], index: 7, kind: output, shape index: {}]  }
   0x1   :  { %14 = vsyncpa [#allocation8], 0  ;;  %s23_s26 = sshll.u32 %s1051_s1, 4  ;;  %s24_s26 = int_to_ptr.vmem [resolvable:$true] %s23_s26 }
   0x2   :  { %15 = vsyncpa [#allocation5], 0  ;;  %s32_s29 = sshll.u32 %s1052_s2, 4  ;;  %s737_s30 = smov [#allocation4]   ;;  %s33_s29 = int_to_ptr.vmem [resolvable:$true] %s32_s29 }
   0x3   :  { %26 = dma.vmem_to_smem %s24_s26, 128, %s737_s30, [#allocation6]  }
   0x4   :  { %s738_s8 = smov [#allocation7]   ;;  %s40_s11 = sshll.u32 %s1053_s3, 4  ;;  %s41_s11 = int_to_ptr.hbm [resolvable:$true] %s40_s11 }
   0x5   :  { %35 = dma.vmem_to_smem %s33_s29, 16, %s738_s8, [#allocation8]  }
   0x6   :  { %s739_s12 = smov [#allocation9]   ;;  %s740_s1 = smov 256  }
   0x7   :  { %s42_s13 = sshll.u32 %s739_s12, 4  ;;  %s741_s14 = smov 16   ;;  %s43_s13 = int_to_ptr.vmem [resolvable:$true] %s42_s13 }
   0x8   :  { %48 = dma.hbm_to_vmem [thread:$0]  %s41_s11, 16384, %s43_s13, [#allocation5], %s740_s1, %s740_s1, %s741_s14  }
   0x9   :  { %731 = dma.done.wait [#allocation6], 128  }
   0xa   :  { %732 = vsyncadd [#allocation6], 4294967168 }
   0xb   :  { %733 = dma.done.wait [#allocation8], 16  }
   0xc   :  { %734 = vsyncadd [#allocation8], 4294967280 }
   0xd   :  { %735 = dma.done.wait [#allocation5], 16384  }
   0xe   :  { %736 = vsyncadd [#allocation5], 4294950912 }
   0xf   :  { %67 = sfence }
  0x10   :  { %s672_s2 = sld [smem:[#allocation4 + $0x380]]  ;;  %v797_v0 = vld [vmem:[%s1050_s0] sm:$0xff]  ;;  %v351_v1 = vld [vmem:[#allocation9 + $0x2f0] sm:$0xff]  ;;  %v806_v4 = vld [vmem:[%s1050_s0 + $0x8] sm:$0xff]  ;;  %vm94_vm0 = vcmask 523264   ;;  %vm119_vm1 = vcmask 1048064  }
  0x11   :  { %s792_s15 = sld [smem:[#allocation4 + $0x381]]  ;;  %v383_v2 = vld [vmem:[#allocation9 + $0x3f0] sm:$0xff]  ;;  %v349_v3 = vld [vmem:[#allocation9 + $0x2e0] sm:$0xff]  ;;  %431 = vmatpush.msra.mxu2 %v351_v1  ;;  %v820_v10 = vld [vmem:[%s1050_s0 + $0x18] sm:$0xff]  ;;  %vm627_vm2 = vcmask 7168  }
  0x12   :  { %s799_s3 = sld [smem:[#allocation4 + $0x382]]  ;;  %v811_v5 = vld [vmem:[%s1050_s0 + $0x10] sm:$0xff]  ;;  %451 = vmatpush.msra.mxu3 %v383_v2  ;;  %v381_v6 = vld [vmem:[#allocation9 + $0x3e0] sm:$0xff] }
  0x13   :  { %s801_s18 = sld [smem:[#allocation4 + $0x383]]  ;;  %v347_v7 = vld [vmem:[#allocation9 + $0x2d0] sm:$0xff]  ;;  %432 = vmatpush.msra.mxu2 %v349_v3  ;;  %v345_v12 = vld [vmem:[#allocation9 + $0x2c0] sm:$0xff] }
  0x14   :  { %s813_s23 = sld [smem:[#allocation7 + $0x7]]  ;;  %v379_v8 = vld [vmem:[#allocation9 + $0x3d0] sm:$0xff]  ;;  %452 = vmatpush.msra.mxu3 %v381_v6  ;;  %v377_v16 = vld [vmem:[#allocation9 + $0x3c0] sm:$0xff] }
  0x15   :  { %s815_s24 = sld [smem:[#allocation4 + $0x280]]  ;;  %v287_v9 = vld [vmem:[#allocation9 + $0xf0] sm:$0xff]  ;;  %v285_v17 = vld [vmem:[#allocation9 + $0xe0] sm:$0xff]  ;;  %433 = vmatpush.msra.mxu2 %v347_v7 }
  0x16   :  { %v230_v11 = vstv %s672_s2  ;;  %s822_s27 = sld [smem:[#allocation4 + $0x281]]  ;;  %v319_v13 = vld [vmem:[#allocation9 + $0x1f0] sm:$0xff]  ;;  %391 = vmatpush.msra.mxu0 %v287_v9  ;;  %v317_v18 = vld [vmem:[#allocation9 + $0x1e0] sm:$0xff]  ;;  %453 = vmatpush.msra.mxu3 %v379_v8  ;;  %s742_s2 = smov 64  }
  0x17   :  { %v231_v14 = vmul.f32 %v230_v11, %v797_v0  ;;  %v233_v15 = vstv %s792_s15  ;;  %s826_s28 = sld [smem:[#allocation4 + $0x282]]  ;;  %411 = vmatpush.msra.mxu1 %v319_v13  ;;  %v283_v21 = vld [vmem:[#allocation9 + $0xd0] sm:$0xff]  ;;  %434 = vmatpush.msra.mxu2 %v345_v12  ;;  %v281_v29 = vld [vmem:[#allocation9 + $0xc0] sm:$0xff] }
  0x18   :  { %v234_v19 = vmul.f32 %v806_v4, %v233_v15  ;;  %v237_v20 = vstv %s799_s3  ;;  %s830_s0 = sld [smem:[#allocation4 + $0x283]]  ;;  %v315_v22 = vld [vmem:[#allocation9 + $0x1d0] sm:$0xff]  ;;  %392 = vmatpush.msra.mxu0 %v285_v17  ;;  %454 = vmatpush.msra.mxu3 %v377_v16  ;;  %v313_v30 = vld [vmem:[#allocation9 + $0x1c0] sm:$0xff] }
  0x19   :  { %v238_v23 = vmul.f32 %v811_v5, %v237_v20  ;;  %v241_v24 = vstv %s801_s18  ;;  %s834_s29 = sld [smem:[#allocation7 + $0x5]]  ;;  %v343_v25 = vld [vmem:[#allocation9 + $0x2b0] sm:$0xff]  ;;  %412 = vmatpush.msra.mxu1 %v317_v18  ;;  %v341_v32 = vld [vmem:[#allocation9 + $0x2a0] sm:$0xff] }
  0x1a   :  { %v375_v26 = vld [vmem:[#allocation9 + $0x3b0] sm:$0xff]  ;;  %v235_v27 = vadd.f32 %v234_v19, %v231_v14  ;;  %v242_v28 = vmul.f32 %v820_v10, %v241_v24  ;;  %s837_s30 = sld [smem:[#allocation4 + $0x180]]  ;;  %v373_v33 = vld [vmem:[#allocation9 + $0x3a0] sm:$0xff]  ;;  %393 = vmatpush.msra.mxu0 %v283_v21  ;;  %435 = vmatpush.msra.mxu2 %v343_v25  ;;  %v245_v39 = vstv %s813_s23 }
  0x1b   :  { %v186_v31 = vstv %s815_s24  ;;  %s840_s8 = sld [smem:[#allocation4 + $0x181]]  ;;  %413 = vmatpush.msra.mxu1 %v315_v22  ;;  %455 = vmatpush.msra.mxu3 %v375_v26  ;;  %v279_v37 = vld [vmem:[#allocation9 + $0xb0] sm:$0xff]  ;;  %v277_v47 = vld [vmem:[#allocation9 + $0xa0] sm:$0xff] }
  0x1c   :  { %v239_v34 = vadd.f32 %v238_v23, %v235_v27  ;;  %v187_v35 = vmul.f32 %v186_v31, %v797_v0  ;;  %v189_v36 = vstv %s822_s27  ;;  %s844_s9 = sld [smem:[#allocation4 + $0x182]]  ;;  %v311_v38 = vld [vmem:[#allocation9 + $0x1b0] sm:$0xff]  ;;  %394 = vmatpush.msra.mxu0 %v281_v29  ;;  %436 = vmatpush.msra.mxu2 %v341_v32  ;;  %v309_v48 = vld [vmem:[#allocation9 + $0x1a0] sm:$0xff] }
  0x1d   :  { %v190_v40 = vmul.f32 %v806_v4, %v189_v36  ;;  %v193_v41 = vstv %s826_s28  ;;  %s849_s10 = sld [smem:[#allocation4 + $0x183]]  ;;  %v339_v42 = vld [vmem:[#allocation9 + $0x290] sm:$0xff]  ;;  %414 = vmatpush.msra.mxu1 %v313_v30  ;;  %456 = vmatpush.msra.mxu3 %v373_v33  ;;  %v337_v51 = vld [vmem:[#allocation9 + $0x280] sm:$0xff] }
  0x1e   :  { %v371_v43 = vld [vmem:[#allocation9 + $0x390] sm:$0xff]  ;;  %v243_v44 = vadd.f32 %v242_v28, %v239_v34  ;;  %v194_v45 = vmul.f32 %v811_v5, %v193_v41  ;;  %v197_v46 = vstv %s830_s0  ;;  %s853_s11 = sld [smem:[#allocation7 + $0x3]]  ;;  %v369_v52 = vld [vmem:[#allocation9 + $0x380] sm:$0xff]  ;;  %395 = vmatpush.msra.mxu0 %v279_v37  ;;  %437 = vmatpush.msra.mxu2 %v339_v42 }
  0x1f   :  { %v191_v49 = vadd.f32 %v190_v40, %v187_v35  ;;  %v198_v50 = vmul.f32 %v820_v10, %v197_v46  ;;  %s856_s12 = sld [smem:[#allocation4 + $0x80]]  ;;  %415 = vmatpush.msra.mxu1 %v311_v38  ;;  %457 = vmatpush.msra.mxu3 %v371_v43  ;;  %v275_v55 = vld [vmem:[#allocation9 + $0x90] sm:$0xff]  ;;  %v201_v62 = vstv %s834_s29  ;;  %v273_v3 = vld [vmem:[#allocation9 + $0x80] sm:$0xff] }
  0x20   :  { %v246_v53 = vadd.f32 %v245_v39, %v243_v44  ;;  %v142_v54 = vstv %s837_s30  ;;  %s859_s13 = sld [smem:[#allocation4 + $0x81]]  ;;  %v307_v56 = vld [vmem:[#allocation9 + $0x190] sm:$0xff]  ;;  %396 = vmatpush.msra.mxu0 %v277_v47  ;;  %438 = vmatpush.msra.mxu2 %v337_v51  ;;  %v333_v9 = vld [vmem:[#allocation9 + $0x260] sm:$0xff] }
  0x21   :  { %v195_v57 = vadd.f32 %v194_v45, %v191_v49  ;;  %v143_v58 = vmul.f32 %v142_v54, %v797_v0  ;;  %v145_v59 = vstv %s840_s8  ;;  %s863_s1 = sld [smem:[#allocation4 + $0x82]]  ;;  %v335_v60 = vld [vmem:[#allocation9 + $0x270] sm:$0xff]  ;;  %416 = vmatpush.msra.mxu1 %v309_v48  ;;  %458 = vmatpush.msra.mxu3 %v369_v52  ;;  %v305_v11 = vld [vmem:[#allocation9 + $0x180] sm:$0xff] }
  0x22   :  { %v247_v61 = vmax.f32 %v246_v53, 0.0  ;;  %v146_v63 = vmul.f32 %v806_v4, %v145_v59  ;;  %v149_v1 = vstv %s844_s9  ;;  %s868_s14 = sld [smem:[#allocation4 + $0x83]]  ;;  %v367_v2 = vld [vmem:[#allocation9 + $0x370] sm:$0xff]  ;;  %397 = vmatpush.msra.mxu0 %v275_v55  ;;  %439 = vmatpush.msra.mxu2 %v335_v60  ;;  %v365_v14 = vld [vmem:[#allocation9 + $0x360] sm:$0xff]  ;;  %v384_v59 = vld [vmem:[#allocation9 + $0x3f8] sm:$0xff] }
  0x23   :  { %v199_v6 = vadd.f32 %v198_v50, %v195_v57  ;;  %v150_v7 = vmul.f32 %v811_v5, %v149_v1  ;;  %v153_v8 = vstv %s849_s10  ;;  %417 = vmatpush.msra.mxu1 %v307_v56  ;;  %s874_s15 = sld [smem:[#allocation7 + $0x1]]  ;;  %v271_v15 = vld [vmem:[#allocation9 + $0x70] sm:$0xff]  ;;  %459 = vmatpush.msra.mxu3 %v367_v2  ;;  %v329_v28 = vld [vmem:[#allocation9 + $0x240] sm:$0xff] }
  0x24   :  { %249 = vrot.lane.b32.xlu1 %v247_v61, %s742_s2  ;;  %v147_v12 = vadd.f32 %v146_v63, %v143_v58  ;;  %v154_v13 = vmul.f32 %v820_v10, %v153_v8  ;;  %v331_v18 = vld [vmem:[#allocation9 + $0x250] sm:$0xff]  ;;  %398 = vmatpush.msra.mxu0 %v273_v3  ;;  %v157_v25 = vstv %s853_s11  ;;  %v269_v29 = vld [vmem:[#allocation9 + $0x60] sm:$0xff]  ;;  %v352_v58 = vld [vmem:[#allocation9 + $0x2f8] sm:$0xff]  ;;  %s667_s16 = sld [smem:[#allocation4 + $0x300]] }
  0x25   :  { %v202_v16 = vadd.f32 %v201_v62, %v199_v6  ;;  %v97_v17 = vstv %s856_s12  ;;  %v303_v19 = vld [vmem:[#allocation9 + $0x170] sm:$0xff]  ;;  %440 = vmatpush.msra.mxu2 %v333_v9  ;;  %418 = vmatpush.msra.mxu1 %v305_v11  ;;  %v361_v33 = vld [vmem:[#allocation9 + $0x340] sm:$0xff]  ;;  %v350_v62 = vld [vmem:[#allocation9 + $0x2e8] sm:$0xff]  ;;  %s668_s17 = sld [smem:[#allocation4 + $0x301]] }
  0x26   :  { %v151_v20 = vadd.f32 %v150_v7, %v147_v12  ;;  %v98_v21 = vmul.f32 %v97_v17, %v797_v0  ;;  %v100_v22 = vstv %s859_s13  ;;  %v363_v23 = vld [vmem:[#allocation9 + $0x350] sm:$0xff]  ;;  %460 = vmatpush.msra.mxu3 %v365_v14  ;;  %399 = vmatpush.msra.mxu0 %v271_v15  ;;  %v301_v34 = vld [vmem:[#allocation9 + $0x160] sm:$0xff]  ;;  %v382_v63 = vld [vmem:[#allocation9 + $0x3e8] sm:$0xff]  ;;  %s669_s3 = sld [smem:[#allocation4 + $0x302]] }
  0x27   :  { %v203_v24 = vmax.f32 %v202_v16, 0.0  ;;  %v101_v26 = vmul.f32 %v806_v4, %v100_v22  ;;  %v104_v27 = vstv %s863_s1  ;;  %441 = vmatpush.msra.mxu2 %v331_v18  ;;  %419 = vmatpush.msra.mxu1 %v303_v19  ;;  %v327_v37 = vld [vmem:[#allocation9 + $0x230] sm:$0xff]  ;;  %v325_v43 = vld [vmem:[#allocation9 + $0x220] sm:$0xff]  ;;  %v348_v3 = vld [vmem:[#allocation9 + $0x2d8] sm:$0xff]  ;;  %s670_s18 = sld [smem:[#allocation4 + $0x303]] }
  0x28   :  { %v155_v30 = vadd.f32 %v154_v13, %v151_v20  ;;  %v105_v31 = vmul.f32 %v811_v5, %v104_v27  ;;  %v108_v32 = vstv %s868_s14  ;;  %461 = vmatpush.msra.mxu3 %v363_v23  ;;  %v267_v38 = vld [vmem:[#allocation9 + $0x50] sm:$0xff]  ;;  %400 = vmatpush.msra.mxu0 %v269_v29  ;;  %v357_v46 = vld [vmem:[#allocation9 + $0x320] sm:$0xff]  ;;  %v380_v6 = vld [vmem:[#allocation9 + $0x3d8] sm:$0xff]  ;;  %s657_s19 = sld [smem:[#allocation4 + $0x200]] }
  0x29   :  { %205 = vrot.lane.b32.xlu0 %v203_v24, %s742_s2  ;;  %v102_v35 = vadd.f32 %v101_v26, %v98_v21  ;;  %v109_v36 = vmul.f32 %v820_v10, %v108_v32  ;;  %442 = vmatpush.msra.mxu2 %v329_v28  ;;  %v359_v40 = vld [vmem:[#allocation9 + $0x330] sm:$0xff]  ;;  %v112_v45 = vstv %s874_s15  ;;  %v265_v47 = vld [vmem:[#allocation9 + $0x40] sm:$0xff]  ;;  %v346_v9 = vld [vmem:[#allocation9 + $0x2c8] sm:$0xff]  ;;  %s658_s20 = sld [smem:[#allocation4 + $0x201]] }
  0x2a   :  { %v158_v39 = vadd.f32 %v157_v25, %v155_v30  ;;  %v299_v41 = vld [vmem:[#allocation9 + $0x150] sm:$0xff]  ;;  %462 = vmatpush.msra.mxu3 %v361_v33  ;;  %420 = vmatpush.msra.mxu1 %v301_v34  ;;  %v297_v50 = vld [vmem:[#allocation9 + $0x140] sm:$0xff]  ;;  %v378_v11 = vld [vmem:[#allocation9 + $0x3c8] sm:$0xff]  ;;  %s889_s21 = sld [smem:[#allocation7 + $0x6]]  ;;  %v210_v29 = vstv %s667_s16 }
  0x2b   :  { %v106_v42 = vadd.f32 %v105_v31, %v102_v35  ;;  %443 = vmatpush.msra.mxu2 %v327_v37  ;;  %401 = vmatpush.msra.mxu0 %v267_v38  ;;  %v323_v49 = vld [vmem:[#allocation9 + $0x210] sm:$0xff]  ;;  %v321_v54 = vld [vmem:[#allocation9 + $0x200] sm:$0xff]  ;;  %v288_v12 = vld [vmem:[#allocation9 + $0xf8] sm:$0xff]  ;;  %s659_s22 = sld [smem:[#allocation4 + $0x202]]  ;;  %v213_v28 = vstv %s668_s17 }
  0x2c   :  { %v159_v44 = vmax.f32 %v158_v39, 0.0  ;;  %463 = vmatpush.msra.mxu3 %v359_v40  ;;  %421 = vmatpush.msra.mxu1 %v299_v41  ;;  %v355_v51 = vld [vmem:[#allocation9 + $0x310] sm:$0xff]  ;;  %v353_v56 = vld [vmem:[#allocation9 + $0x300] sm:$0xff]  ;;  %v320_v13 = vld [vmem:[#allocation9 + $0x1f8] sm:$0xff]  ;;  %s660_s23 = sld [smem:[#allocation4 + $0x203]]  ;;  %v217_v30 = vstv %s669_s3  ;;  %v214_v31 = vmul.f32 %v806_v4, %v213_v28 }
  0x2d   :  { %v110_v48 = vadd.f32 %v109_v36, %v106_v42  ;;  %444 = vmatpush.msra.mxu2 %v325_v43  ;;  %v263_v52 = vld [vmem:[#allocation9 + $0x30] sm:$0xff]  ;;  %402 = vmatpush.msra.mxu0 %v265_v47  ;;  %v261_v60 = vld [vmem:[#allocation9 + $0x20] sm:$0xff]  ;;  %v344_v14 = vld [vmem:[#allocation9 + $0x2b8] sm:$0xff]  ;;  %s891_s24 = sld [smem:[#allocation7 + $0x4]]  ;;  %v221_v32 = vstv %s670_s18  ;;  %v218_v35 = vmul.f32 %v811_v5, %v217_v30  ;;  %v211_v36 = vmul.f32 %v210_v29, %v797_v0 }
  0x2e   :  { %161 = vrot.lane.b32.xlu1 %v159_v44, %s742_s2  ;;  %464 = vmatpush.msra.mxu3 %v357_v46  ;;  %v295_v55 = vld [vmem:[#allocation9 + $0x130] sm:$0xff]  ;;  %v293_v61 = vld [vmem:[#allocation9 + $0x120] sm:$0xff]  ;;  %v376_v15 = vld [vmem:[#allocation9 + $0x3b8] sm:$0xff]  ;;  %s893_s25 = sld [smem:[#allocation4 + $0x100]]  ;;  %v166_v33 = vstv %s657_s19  ;;  %v222_v40 = vmul.f32 %v820_v10, %v221_v32 }
  0x2f   :  { %v113_v53 = vadd.f32 %v112_v45, %v110_v48  ;;  %445 = vmatpush.msra.mxu2 %v323_v49  ;;  %422 = vmatpush.msra.mxu1 %v297_v50  ;;  %v259_v1 = vld [vmem:[#allocation9 + $0x10] sm:$0xff]  ;;  %v257_v7 = vld [vmem:[#allocation9] sm:$0xff]  ;;  %v286_v16 = vld [vmem:[#allocation9 + $0xe8] sm:$0xff]  ;;  %s895_s26 = sld [smem:[#allocation4 + $0x101]]  ;;  %v169_v34 = vstv %s658_s20  ;;  %v167_v38 = vmul.f32 %v166_v33, %v797_v0  ;;  %v215_v41 = vadd.f32 %v214_v31, %v211_v36 }
  0x30   :  { %465 = vmatpush.msra.mxu3 %v355_v51  ;;  %403 = vmatpush.msra.mxu0 %v263_v52  ;;  %v291_v2 = vld [vmem:[#allocation9 + $0x110] sm:$0xff]  ;;  %v289_v8 = vld [vmem:[#allocation9 + $0x100] sm:$0xff]  ;;  %v318_v17 = vld [vmem:[#allocation9 + $0x1e8] sm:$0xff]  ;;  %s898_s27 = sld [smem:[#allocation4]]  ;;  %v170_v37 = vmul.f32 %v806_v4, %v169_v34  ;;  %v225_v48 = vstv %s889_s21 }
  0x31   :  { %v114_v57 = vmax.f32 %v113_v53, 0.0  ;;  %446 = vmatpush.msra.mxu2 %v321_v54  ;;  %423 = vmatpush.msra.mxu1 %v295_v55  ;;  %v342_v18 = vld [vmem:[#allocation9 + $0x2a8] sm:$0xff]  ;;  %v284_v20 = vld [vmem:[#allocation9 + $0xd8] sm:$0xff]  ;;  %s900_s28 = sld [smem:[#allocation4 + $0x1]]  ;;  %v173_v39 = vstv %s659_s22  ;;  %v219_v45 = vadd.f32 %v218_v35, %v215_v41 }
  0x32   :  { %466 = vmatpush.msra.mxu3 %v353_v56  ;;  %404 = vmatpush.msra.mxu0 %v261_v60  ;;  %v374_v19 = vld [vmem:[#allocation9 + $0x3a8] sm:$0xff]  ;;  %v316_v21 = vld [vmem:[#allocation9 + $0x1d8] sm:$0xff]  ;;  %s906_s0 = sld [smem:[#allocation4 + $0x102]]  ;;  %v174_v42 = vmul.f32 %v811_v5, %v173_v39  ;;  %v171_v43 = vadd.f32 %v170_v37, %v167_v38  ;;  %v177_v44 = vstv %s660_s23 }
  0x33   :  { %116 = vrot.lane.b32.xlu0 %v114_v57, %s742_s2  ;;  %511 = vmatpush.msrb.mxu2 %v352_v58  ;;  %v340_v22 = vld [vmem:[#allocation9 + $0x298] sm:$0xff]  ;;  %v282_v24 = vld [vmem:[#allocation9 + $0xc8] sm:$0xff]  ;;  %s908_s29 = sld [smem:[#allocation4 + $0x2]]  ;;  %v178_v46 = vmul.f32 %v820_v10, %v177_v44  ;;  %v223_v49 = vadd.f32 %v222_v40, %v219_v45  ;;  %v181_v50 = vstv %s891_s24 }
  0x34   :  { %531 = vmatpush.msrb.mxu3 %v384_v59  ;;  %424 = vmatpush.msra.mxu1 %v293_v61  ;;  %v372_v23 = vld [vmem:[#allocation9 + $0x398] sm:$0xff]  ;;  %v314_v25 = vld [vmem:[#allocation9 + $0x1c8] sm:$0xff]  ;;  %s912_s30 = sld [smem:[#allocation4 + $0x103]]  ;;  %v175_v47 = vadd.f32 %v174_v42, %v171_v43  ;;  %v122_v52 = vstv %s893_s25 }
  0x35   :  { %512 = vmatpush.msrb.mxu2 %v350_v62  ;;  %405 = vmatpush.msra.mxu0 %v259_v1  ;;  %v338_v26 = vld [vmem:[#allocation9 + $0x288] sm:$0xff]  ;;  %s914_s8 = sld [smem:[#allocation4 + $0x3]]  ;;  %v125_v53 = vstv %s895_s26  ;;  %v226_v56 = vadd.f32 %v225_v48, %v223_v49  ;;  %v123_v59 = vmul.f32 %v122_v52, %v797_v0  ;;  %v272_v36 = vld [vmem:[#allocation9 + $0x78] sm:$0xff] }
  0x36   :  { %532 = vmatpush.msrb.mxu3 %v382_v63  ;;  %425 = vmatpush.msra.mxu1 %v291_v2  ;;  %v370_v27 = vld [vmem:[#allocation9 + $0x388] sm:$0xff]  ;;  %s918_s9 = sld [smem:[#allocation7 + $0x2]]  ;;  %v179_v51 = vadd.f32 %v178_v46, %v175_v47  ;;  %v76_v54 = vstv %s898_s27  ;;  %v126_v58 = vmul.f32 %v806_v4, %v125_v53  ;;  %v304_v37 = vld [vmem:[#allocation9 + $0x178] sm:$0xff] }
  0x37   :  { %513 = vmatpush.msrb.mxu2 %v348_v3  ;;  %406 = vmatpush.msra.mxu0 %v257_v7  ;;  %v79_v55 = vstv %s900_s28  ;;  %s927_s10 = sld [smem:[#allocation7]]  ;;  %v77_v63 = vmul.f32 %v76_v54, %v797_v0  ;;  %v227_v1 = vmax.f32 %v226_v56, 0.0  ;;  %v280_v7 = vld [vmem:[#allocation9 + $0xb8] sm:$0xff]  ;;  %v310_v0 = vld [vmem:[#allocation9 + $0x1a8] sm:$0xff] }
  0x38   :  { %533 = vmatpush.msrb.mxu3 %v380_v6  ;;  %426 = vmatpush.msra.mxu1 %v289_v8  ;;  %v182_v57 = vadd.f32 %v181_v50, %v179_v51  ;;  %v129_v60 = vstv %s906_s0  ;;  %v80_v61 = vmul.f32 %v806_v4, %v79_v55  ;;  %v127_v6 = vadd.f32 %v126_v58, %v123_v59  ;;  %v312_v8 = vld [vmem:[#allocation9 + $0x1b8] sm:$0xff]  ;;  %v330_v29 = vld [vmem:[#allocation9 + $0x248] sm:$0xff] }
  0x39   :  { %514 = vmatpush.msrb.mxu2 %v346_v9  ;;  %471 = vmatpush.msrb.mxu0 %v288_v12  ;;  %v83_v62 = vstv %s908_s29  ;;  %v130_v3 = vmul.f32 %v811_v5, %v129_v60  ;;  %v336_v9 = vld [vmem:[#allocation9 + $0x278] sm:$0xff]  ;;  %228 = vst.msk [vmem:[#allocation2 + $0x18] sm:$0xff] %vm94_vm0, %v227_v1  ;;  %v362_v30 = vld [vmem:[#allocation9 + $0x348] sm:$0xff] }
  0x3a   :  { %534 = vmatpush.msrb.mxu3 %v378_v11  ;;  %491 = vmatpush.msrb.mxu1 %v320_v13  ;;  %v183_v2 = vmax.f32 %v182_v57, 0.0  ;;  %v133_v11 = vstv %s912_s30  ;;  %v84_v12 = vmul.f32 %v811_v5, %v83_v62  ;;  %v368_v4 = vld [vmem:[#allocation9 + $0x378] sm:$0xff]  ;;  %v270_v40 = vld [vmem:[#allocation9 + $0x68] sm:$0xff] }
  0x3b   :  { %515 = vmatpush.msrb.mxu2 %v344_v14  ;;  %472 = vmatpush.msrb.mxu0 %v286_v16  ;;  %v87_v13 = vstv %s914_s8  ;;  %v278_v14 = vld [vmem:[#allocation9 + $0xa8] sm:$0xff]  ;;  %v131_v16 = vadd.f32 %v130_v3, %v127_v6  ;;  %v328_v38 = vld [vmem:[#allocation9 + $0x238] sm:$0xff] }
  0x3c   :  { %535 = vmatpush.msrb.mxu3 %v376_v15  ;;  %492 = vmatpush.msrb.mxu1 %v318_v17  ;;  %v134_v15 = vmul.f32 %v820_v10, %v133_v11  ;;  %184 = vst.msk [vmem:[#allocation2 + $0x10] sm:$0xff] %vm94_vm0, %v183_v2  ;;  %v334_v17 = vld [vmem:[#allocation9 + $0x268] sm:$0xff]  ;;  %v137_v5 = vstv %s918_s9  ;;  %v360_v39 = vld [vmem:[#allocation9 + $0x338] sm:$0xff] }
  0x3d   :  { %516 = vmatpush.msrb.mxu2 %v342_v18  ;;  %473 = vmatpush.msrb.mxu0 %v284_v20  ;;  %v366_v18 = vld [vmem:[#allocation9 + $0x368] sm:$0xff]  ;;  %v88_v20 = vmul.f32 %v820_v10, %v87_v13  ;;  %v91_v32 = vstv %s927_s10  ;;  %v268_v44 = vld [vmem:[#allocation9 + $0x58] sm:$0xff]  ;;  %v567_v13 = vld [vmem:[%s1055_s5 + $0x70] sm:$0xff] }
  0x3e   :  { %536 = vmatpush.msrb.mxu3 %v374_v19  ;;  %493 = vmatpush.msrb.mxu1 %v316_v21  ;;  %v276_v19 = vld [vmem:[#allocation9 + $0x98] sm:$0xff]  ;;  %v81_v21 = vadd.f32 %v80_v61, %v77_v63  ;;  %v302_v41 = vld [vmem:[#allocation9 + $0x168] sm:$0xff] }
  0x3f   :  { %517 = vmatpush.msrb.mxu2 %v340_v22  ;;  %474 = vmatpush.msrb.mxu0 %v282_v24  ;;  %v308_v22 = vld [vmem:[#allocation9 + $0x198] sm:$0xff]  ;;  %v326_v42 = vld [vmem:[#allocation9 + $0x228] sm:$0xff] }
  0x40   :  { %537 = vmatpush.msrb.mxu3 %v372_v23  ;;  %494 = vmatpush.msrb.mxu1 %v314_v25  ;;  %v332_v23 = vld [vmem:[#allocation9 + $0x258] sm:$0xff]  ;;  %v135_v25 = vadd.f32 %v134_v15, %v131_v16  ;;  %v85_v28 = vadd.f32 %v84_v12, %v81_v21  ;;  %v358_v43 = vld [vmem:[#allocation9 + $0x328] sm:$0xff]  ;;  %v581_v12 = vld [vmem:[%s1055_s5 + $0xe0] sm:$0xff] }
  0x41   :  { %518 = vmatpush.msrb.mxu2 %v338_v26  ;;  %475 = vmatpush.msrb.mxu0 %v280_v7  ;;  %v364_v24 = vld [vmem:[#allocation9 + $0x358] sm:$0xff]  ;;  %v274_v26 = vld [vmem:[#allocation9 + $0x88] sm:$0xff]  ;;  %v583_v7 = vld [vmem:[%s1055_s5 + $0xf0] sm:$0xff] }
  0x42   :  { %538 = vmatpush.msrb.mxu3 %v370_v27  ;;  %495 = vmatpush.msrb.mxu1 %v312_v8  ;;  %v306_v27 = vld [vmem:[#allocation9 + $0x188] sm:$0xff]  ;;  %v138_v31 = vadd.f32 %v137_v5, %v135_v25  ;;  %v89_v10 = vadd.f32 %v88_v20, %v85_v28  ;;  %v300_v45 = vld [vmem:[#allocation9 + $0x158] sm:$0xff]  ;;  %v563_v16 = vld [vmem:[%s1055_s5 + $0x50] sm:$0xff] }
  0x43   :  { %519 = vmatpush.msrb.mxu2 %v336_v9  ;;  %476 = vmatpush.msrb.mxu0 %v278_v14  ;;  %v324_v46 = vld [vmem:[#allocation9 + $0x218] sm:$0xff]  ;;  %v266_v48 = vld [vmem:[#allocation9 + $0x48] sm:$0xff]  ;;  %v559_v5 = vld [vmem:[%s1055_s5 + $0x30] sm:$0xff] }
  0x44   :  { %539 = vmatpush.msrb.mxu3 %v368_v4  ;;  %496 = vmatpush.msrb.mxu1 %v310_v0  ;;  %v139_v33 = vmax.f32 %v138_v31, 0.0  ;;  %v92_v34 = vadd.f32 %v91_v32, %v89_v10  ;;  %v356_v47 = vld [vmem:[#allocation9 + $0x318] sm:$0xff]  ;;  %v298_v49 = vld [vmem:[#allocation9 + $0x148] sm:$0xff]  ;;  %v565_v0 = vld [vmem:[%s1055_s5 + $0x60] sm:$0xff] }
  0x45   :  { %520 = vmatpush.msrb.mxu2 %v334_v17  ;;  %477 = vmatpush.msrb.mxu0 %v276_v19  ;;  %v322_v50 = vld [vmem:[#allocation9 + $0x208] sm:$0xff]  ;;  %v264_v52 = vld [vmem:[#allocation9 + $0x38] sm:$0xff]  ;;  %v579_v20 = vld [vmem:[%s1055_s5 + $0xd0] sm:$0xff] }
  0x46   :  { %540 = vmatpush.msrb.mxu3 %v366_v18  ;;  %497 = vmatpush.msrb.mxu1 %v308_v22  ;;  %140 = vst.msk [vmem:[#allocation2 + $0x8] sm:$0xff] %vm94_vm0, %v139_v33  ;;  %v93_v35 = vmax.f32 %v92_v34, 0.0  ;;  %v354_v51 = vld [vmem:[#allocation9 + $0x308] sm:$0xff]  ;;  %v296_v53 = vld [vmem:[#allocation9 + $0x138] sm:$0xff]  ;;  %v561_v18 = vld [vmem:[%s1055_s5 + $0x40] sm:$0xff] }
  0x47   :  { %521 = vmatpush.msrb.mxu2 %v332_v23  ;;  %478 = vmatpush.msrb.mxu0 %v274_v26  ;;  %v262_v54 = vld [vmem:[#allocation9 + $0x28] sm:$0xff]  ;;  %v260_v56 = vld [vmem:[#allocation9 + $0x18] sm:$0xff]  ;;  %v557_v23 = vld [vmem:[%s1055_s5 + $0x20] sm:$0xff] }
  0x48   :  { %541 = vmatpush.msrb.mxu3 %v364_v24  ;;  %498 = vmatpush.msrb.mxu1 %v306_v27  ;;  %95 = vst.msk [vmem:[#allocation2] sm:$0xff] %vm94_vm0, %v93_v35  ;;  %v294_v55 = vld [vmem:[#allocation9 + $0x128] sm:$0xff]  ;;  %v292_v57 = vld [vmem:[#allocation9 + $0x118] sm:$0xff]  ;;  %v577_v24 = vld [vmem:[%s1055_s5 + $0xc0] sm:$0xff] }
  0x49   :  { %522 = vmatpush.msrb.mxu2 %v330_v29  ;;  %479 = vmatpush.msrb.mxu0 %v272_v36  ;;  %v258_v58 = vld [vmem:[#allocation9 + $0x8] sm:$0xff]  ;;  %v584_v3 = vld [vmem:[%s1055_s5 + $0xf8] sm:$0xff]  ;;  %v555_v27 = vld [vmem:[%s1055_s5 + $0x10] sm:$0xff] }
  0x4a   :  { %542 = vmatpush.msrb.mxu3 %v362_v30  ;;  %499 = vmatpush.msrb.mxu1 %v304_v37  ;;  %v290_v59 = vld [vmem:[#allocation9 + $0x108] sm:$0xff]  ;;  %v568_v9 = vld [vmem:[%s1055_s5 + $0x78] sm:$0xff]  ;;  %v575_v28 = vld [vmem:[%s1055_s5 + $0xb0] sm:$0xff] }
  0x4b   :  { %523 = vmatpush.msrb.mxu2 %v328_v38  ;;  %480 = vmatpush.msrb.mxu0 %v270_v40  ;;  %v582_v8 = vld [vmem:[%s1055_s5 + $0xe8] sm:$0xff]  ;;  %v580_v4 = vld [vmem:[%s1055_s5 + $0xd8] sm:$0xff]  ;;  %v553_v31 = vld [vmem:[%s1055_s5] sm:$0xff] }
  0x4c   :  { %543 = vmatpush.msrb.mxu3 %v360_v39  ;;  %500 = vmatpush.msrb.mxu1 %v302_v41  ;;  %v566_v14 = vld [vmem:[%s1055_s5 + $0x68] sm:$0xff]  ;;  %v564_v15 = vld [vmem:[%s1055_s5 + $0x58] sm:$0xff]  ;;  %v573_v32 = vld [vmem:[%s1055_s5 + $0xa0] sm:$0xff] }
  0x4d   :  { %524 = vmatpush.msrb.mxu2 %v326_v42  ;;  %481 = vmatpush.msrb.mxu0 %v268_v44  ;;  %v562_v17 = vld [vmem:[%s1055_s5 + $0x48] sm:$0xff]  ;;  %v560_v19 = vld [vmem:[%s1055_s5 + $0x38] sm:$0xff]  ;;  %v571_v33 = vld [vmem:[%s1055_s5 + $0x90] sm:$0xff] }
  0x4e   :  { %544 = vmatpush.msrb.mxu3 %v358_v43  ;;  %501 = vmatpush.msrb.mxu1 %v300_v45  ;;  %v558_v21 = vld [vmem:[%s1055_s5 + $0x28] sm:$0xff]  ;;  %v556_v25 = vld [vmem:[%s1055_s5 + $0x18] sm:$0xff]  ;;  %v569_v35 = vld [vmem:[%s1055_s5 + $0x80] sm:$0xff] }
  0x4f   :  { %525 = vmatpush.msrb.mxu2 %v324_v46  ;;  %482 = vmatpush.msrb.mxu0 %v266_v48  ;;  %v578_v22 = vld [vmem:[%s1055_s5 + $0xc8] sm:$0xff]  ;;  %v576_v26 = vld [vmem:[%s1055_s5 + $0xb8] sm:$0xff]  ;;  %v385_v36 = vld [vmem:[%s1054_s4] sm:$0x3] }
  0x50   :  { %545 = vmatpush.msrb.mxu3 %v356_v47  ;;  %502 = vmatpush.msrb.mxu1 %v298_v49  ;;  %v554_v29 = vld [vmem:[%s1055_s5 + $0x8] sm:$0xff]  ;;  %v572_v10 = vld [vmem:[%s1055_s5 + $0x98] sm:$0xff]  ;;  %v387_v37 = vperm.slane %v385_v36, 0  ;;  %v388_v45 = vperm.slane %v385_v36, 1 }
  0x51   :  { %526 = vmatpush.msrb.mxu2 %v322_v50  ;;  %483 = vmatpush.msrb.mxu0 %v264_v52  ;;  %v574_v30 = vld [vmem:[%s1055_s5 + $0xa8] sm:$0xff] }
  0x52   :  { %546 = vmatpush.msrb.mxu3 %v354_v51  ;;  %503 = vmatpush.msrb.mxu1 %v296_v53  ;;  %v570_v34 = vld [vmem:[%s1055_s5 + $0x88] sm:$0xff] }
  0x53   :  { %484 = vmatpush.msrb.mxu0 %v262_v54 }
  0x54   :  { %504 = vmatpush.msrb.mxu1 %v294_v55 }
  0x55   :  { %485 = vmatpush.msrb.mxu0 %v260_v56 }
  0x56   :  { %505 = vmatpush.msrb.mxu1 %v292_v57  ;;  %v586_v57 = vstv %s1056_s6 }
  0x57   :  { %486 = vmatpush.msrb.mxu0 %v258_v58 }
  0x58   :  { %506 = vmatpush.msrb.mxu1 %v290_v59 }
  0x96   :  { %v250_v60 = vpop.permute.xlu1 %249 }
  0x97   :  { %252 = vst.msk [vmem:[#allocation2 + $0x18] sm:$0xff] %vm119_vm1, %v250_v60 }
  0x9b   :  { %v206_v61 = vpop.permute.xlu0 %205 }
  0x9c   :  { %208 = vst.msk [vmem:[#allocation2 + $0x10] sm:$0xff] %vm119_vm1, %v206_v61 }
  0x9e   :  { %v256_v62 = vld [vmem:[#allocation2 + $0x18] sm:$0xff] }
  0x9f   :  { %467 = vmatmul.f32.vlgmr.msra.gmra.mxu3 %v256_v62 }
  0xa0   :  { %v162_v63 = vpop.permute.xlu1 %161 }
  0xa1   :  { %164 = vst.msk [vmem:[#allocation2 + $0x8] sm:$0xff] %vm119_vm1, %v162_v63 }
  0xa3   :  { %v255_v1 = vld [vmem:[#allocation2 + $0x10] sm:$0xff] }
  0xa4   :  { %447 = vmatmul.f32.vlgmr.msra.gmra.mxu2 %v255_v1 }
  0xa5   :  { %v117_v2 = vpop.permute.xlu0 %116 }
  0xa6   :  { %120 = vst.msk [vmem:[#allocation2] sm:$0xff] %vm119_vm1, %v117_v2 }
  0xa7   :  { %547 = vmatmul.f32.vlgmr.msrb.gmra.mxu3 %v256_v62 }
  0xa8   :  { %v254_v6 = vld [vmem:[#allocation2 + $0x8] sm:$0xff] }
  0xa9   :  { %427 = vmatmul.f32.vlgmr.msra.gmra.mxu1 %v254_v6 }
  0xaa   :  { %607 = vmatpush.msra.mxu1 %v584_v3 }
  0xac   :  { %527 = vmatmul.f32.vlgmr.msrb.gmra.mxu2 %v255_v1  ;;  %608 = vmatpush.msra.mxu1 %v583_v7 }
  0xad   :  { %v253_v11 = vld [vmem:[#allocation2] sm:$0xff] }
  0xae   :  { %407 = vmatmul.f32.vlgmr.msra.gmra.mxu0 %v253_v11  ;;  %609 = vmatpush.msra.mxu1 %v582_v8 }
  0xaf   :  { %587 = vmatpush.msra.mxu0 %v568_v9 }
  0xb0   :  { %610 = vmatpush.msra.mxu1 %v581_v12 }
  0xb1   :  { %507 = vmatmul.f32.vlgmr.msrb.gmra.mxu1 %v254_v6  ;;  %588 = vmatpush.msra.mxu0 %v567_v13 }
  0xb2   :  { %611 = vmatpush.msra.mxu1 %v580_v4 }
  0xb3   :  { %589 = vmatpush.msra.mxu0 %v566_v14 }
  0xb4   :  { %612 = vmatpush.msra.mxu1 %v579_v20 }
  0xb5   :  { %590 = vmatpush.msra.mxu0 %v565_v0 }
  0xb6   :  { %487 = vmatmul.f32.vlgmr.msrb.gmra.mxu0 %v253_v11  ;;  %613 = vmatpush.msra.mxu1 %v578_v22 }
  0xb7   :  { %591 = vmatpush.msra.mxu0 %v564_v15 }
  0xb8   :  { %614 = vmatpush.msra.mxu1 %v577_v24 }
  0xb9   :  { %592 = vmatpush.msra.mxu0 %v563_v16 }
  0xba   :  { %615 = vmatpush.msra.mxu1 %v576_v26 }
  0xbb   :  { %593 = vmatpush.msra.mxu0 %v562_v17 }
  0xbc   :  { %616 = vmatpush.msra.mxu1 %v575_v28 }
  0xbd   :  { %594 = vmatpush.msra.mxu0 %v561_v18 }
  0xbe   :  { %617 = vmatpush.msra.mxu1 %v574_v30 }
  0xbf   :  { %595 = vmatpush.msra.mxu0 %v560_v19 }
  0xc0   :  { %618 = vmatpush.msra.mxu1 %v573_v32 }
  0xc1   :  { %596 = vmatpush.msra.mxu0 %v559_v5 }
  0xc2   :  { %619 = vmatpush.msra.mxu1 %v572_v10 }
  0xc3   :  { %597 = vmatpush.msra.mxu0 %v558_v21 }
  0xc4   :  { %620 = vmatpush.msra.mxu1 %v571_v33 }
  0xc5   :  { %598 = vmatpush.msra.mxu0 %v557_v23 }
  0xc6   :  { %621 = vmatpush.msra.mxu1 %v570_v34 }
  0xc7   :  { %599 = vmatpush.msra.mxu0 %v556_v25 }
  0xc8   :  { %622 = vmatpush.msra.mxu1 %v569_v35 }
  0xc9   :  { %600 = vmatpush.msra.mxu0 %v555_v27 }
  0xcb   :  { %601 = vmatpush.msra.mxu0 %v554_v29 }
  0xcd   :  { %602 = vmatpush.msra.mxu0 %v553_v31 }
 0x122   :  { %v468_v43 = vpop.f32.mrf.mxu3 }
 0x126   :  { %v428_v39 = vpop.f32.mrf.mxu1 }
 0x127   :  { %v448_v41 = vpop.f32.mrf.mxu2 }
 0x12a   :  { %v548_v54 = vpop.f32.mrf.mxu3 }
 0x12b   :  { %v408_v38 = vpop.f32.mrf.mxu0 }
 0x12c   :  { %v409_v40 = vadd.f32 %v408_v38, %v387_v37 }
 0x12e   :  { %v429_v42 = vadd.f32 %v428_v39, %v409_v40  ;;  %v508_v50 = vpop.f32.mrf.mxu1 }
 0x12f   :  { %v528_v52 = vpop.f32.mrf.mxu2 }
 0x130   :  { %v449_v44 = vadd.f32 %v448_v41, %v429_v42 }
 0x132   :  { %v469_v46 = vadd.f32 %v468_v43, %v449_v44 }
 0x133   :  { %v488_v47 = vpop.f32.mrf.mxu0 }
 0x134   :  { %v551_v48 = vmax.f32 %v469_v46, 0.0  ;;  %v489_v49 = vadd.f32 %v488_v47, %v388_v45 }
 0x136   :  { %v509_v51 = vadd.f32 %v508_v50, %v489_v49  ;;  %603 = vmatmul.f32.vlgmr.msra.gmra.mxu0 %v551_v48 }
 0x138   :  { %v529_v53 = vadd.f32 %v528_v52, %v509_v51 }
 0x13a   :  { %v549_v55 = vadd.f32 %v548_v54, %v529_v53 }
 0x13c   :  { %v552_v56 = vmax.f32 %v549_v55, 0.0 }
 0x13e   :  { %623 = vmatmul.f32.vlgmr.msra.gmra.mxu1 %v552_v56 }
 0x1b3   :  { %v604_v58 = vpop.f32.mrf.mxu0 }
 0x1b4   :  { %v605_v59 = vadd.f32 %v604_v58, %v586_v57 }
 0x1bb   :  { %v624_v60 = vpop.f32.mrf.mxu1 }
 0x1bc   :  { %v625_v61 = vadd.f32 %v624_v60, %v605_v59 }
 0x1be   :  { %628 = vst.msk [vmem:[%s1057_s7] sm:$0xff] %vm627_vm2, %v625_v61 }
 0x1bf   :  { %633 = vsyncpa [#allocation5], 1 }
 0x1c0   :  { %634 = vsyncpa [#allocation6], 1 }
 0x1c1   :  { %635 = vsyncpa [#allocation8], 1 }

</bundles_post_ra>
